<compile_context>
chip_gen: v6e
topology: v6e:2x2x1
jax: 0.10.0
libtpu: 0.0.40
codegen_flags: <defaults>
</compile_context>

<pallas_src>
import jax
import jax.numpy as jnp
from jax import lax
from jax.experimental import pallas as pl
from jax.experimental.pallas import tpu as pltpu


def _make_icl_kernel(num_pos, inv_temp, eps, inv_b):
    inv_eps = 1.0 / eps

    def kernel(*refs):
        a_row_ref = refs[0]                      # (tB, D) anchor rows (native dtype)
        a_col_ref = refs[1]                      # (tB, D) anchor cols (native dtype)
        pos_refs = refs[2:2 + num_pos]           # P x (tB, D) positives (native dtype)
        out_ref = refs[2 + num_pos]              # (tB, 1) per-row partial loss (f32)
        scale_scr, nom_scr, m_scr, s_scr = refs[3 + num_pos:]

        row_blk = pl.program_id(0)
        col_blk = pl.program_id(1)
        n_col_blk = pl.num_programs(1)
        tb = a_row_ref.shape[0]

        a_row = a_row_ref[...]                   # stays in native dtype for the MXU
        a_col = a_col_ref[...]

        # ---- once per row block: row norms + positive (nominator) logsumexp ----
        @pl.when(col_blk == 0)
        def _():
            a32 = a_row.astype(jnp.float32)
            inv_na = lax.rsqrt(jnp.sum(a32 * a32, axis=-1, keepdims=True))   # EUP
            scale_scr[...] = inv_na * inv_temp            # 1/T folded into row scale

            # Single-pass online logsumexp over the P positives.
            m = None
            s = None
            for p_ref in pos_refs:
                p32 = p_ref[...].astype(jnp.float32)
                dots = jnp.sum(a32 * p32, axis=-1, keepdims=True)            # (tB, 1)
                inv_np = lax.rsqrt(jnp.sum(p32 * p32, axis=-1, keepdims=True))
                # nn.CosineSimilarity: / max(||a||*||p||, eps)
                #   == * min(inv_na*inv_np, 1/eps)   (norms >= 0)
                sc = dots * jnp.minimum(inv_na * inv_np, inv_eps) * inv_temp
                if m is None:
                    m, s = sc, jnp.ones_like(sc)
                else:
                    m_new = jnp.maximum(m, sc)
                    s = s * jnp.exp(m - m_new) + jnp.exp(sc - m_new)
                    m = m_new
            nom_scr[...] = m + jnp.log(s)

            m_scr[...] = jnp.full(m_scr.shape, -jnp.inf, dtype=m_scr.dtype)
            s_scr[...] = jnp.zeros(s_scr.shape, dtype=s_scr.dtype)

        # ---- (tB, tB) Gram block on the MXU (contract last dims, no transpose) ----
        gram = lax.dot_general(
            a_row, a_col,
            dimension_numbers=(((1,), (1,)), ((), ())),
            preferred_element_type=jnp.float32)                               # f32 acc

        c32 = a_col.astype(jnp.float32)
        inv_nc = lax.rsqrt(jnp.sum(c32 * c32, axis=-1, keepdims=True))        # (tB, 1)
        neg = gram * scale_scr[...] * inv_nc.T                                # (tB, tB)

        # Zero the diagonal (PyTorch: * (1 - eye(b))). Global-index compare, so
        # off-diagonal tiles are never actually masked.
        rid = lax.broadcasted_iota(jnp.int32, (tb, tb), 0) + row_blk * tb
        cid = lax.broadcasted_iota(jnp.int32, (tb, tb), 1) + col_blk * tb
        neg = jnp.where(rid == cid, 0.0, neg)

        # ---- streaming logsumexp over column blocks (denominator) ----
        m_new = jnp.maximum(m_scr[...], jnp.max(neg, axis=-1, keepdims=True))
        s_scr[...] = (s_scr[...] * jnp.exp(m_scr[...] - m_new)
                      + jnp.sum(jnp.exp(neg - m_new), axis=-1, keepdims=True))
        m_scr[...] = m_new

        @pl.when(col_blk == n_col_blk - 1)
        def _():
            denom = m_scr[...] + jnp.log(s_scr[...])
            out_ref[...] = (denom - nom_scr[...]) * inv_b

    return kernel


def _pick_row_tile(b, max_tile):
    """Largest row tile <= max_tile that divides b (multiple of 8 if b is tiled)."""
    if b <= max_tile:
        return b
    t = max_tile - (max_tile % 8)
    while t >= 8:
        if b % t == 0:
            return t
        t -= 8
    return b  # fallback: single (possibly large) row block


def icl_loss(anchor, positives_list, temperature=1.0, eps=1e-8, block_rows=256):
    """JAX/Pallas equivalent of ICL.forward(anchor, positives_list).

    block_rows=256 matches the v6e/v7x 256-wide MXU (also a 128-multiple for
    v5e); the full flattened D is kept per block (see TODO for K-chunking).
    """
    assert len(positives_list) >= 1
    b = anchor.shape[0]
    a2 = anchor.reshape(b, -1)                        # native dtype, free reshape
    pos2 = [pp.reshape(b, -1) for pp in positives_list]
    d = a2.shape[1]
    num_pos = len(pos2)

    tb = _pick_row_tile(b, block_rows)
    nblk = b // tb
    grid = (nblk, nblk)

    kernel = _make_icl_kernel(num_pos, 1.0 / float(temperature), float(eps),
                              1.0 / float(b))

    row_spec = pl.BlockSpec((tb, d), lambda i, j: (i, 0))
    col_spec = pl.BlockSpec((tb, d), lambda i, j: (j, 0))
    pos_specs = [pl.BlockSpec((tb, d), lambda i, j: (i, 0)) for _ in range(num_pos)]

    itemsize = a2.dtype.itemsize
    slab = tb * d * itemsize
    # 2 pipeline buffers per input stream + f32 (tB,tB)/(tB,1) temporaries.
    need = 2 * (2 + num_pos) * slab + 8 * tb * tb * 4 + 16 * tb * 4 + (1 << 20)
    vmem_limit = int(min(max(need, 16 << 20), 48 << 20))   # stays under v7x 64 MiB

    cost = pl.CostEstimate(
        flops=int(2 * b * b * d + 2 * (num_pos + 1) * b * d + 4 * b * b),
        transcendentals=int(b * b + (num_pos + 3) * b),
        bytes_accessed=int((1 + nblk + num_pos) * b * d * itemsize + b * 4),
    )

    out = pl.pallas_call(
        kernel,
        out_shape=jax.ShapeDtypeStruct((b, 1), jnp.float32),
        grid_spec=pltpu.PrefetchScalarGridSpec(
            num_scalar_prefetch=0,
            grid=grid,
            in_specs=[row_spec, col_spec] + pos_specs,
            out_specs=pl.BlockSpec((tb, 1), lambda i, j: (i, 0)),
            scratch_shapes=[pltpu.VMEM((tb, 1), jnp.float32)] * 4,
        ),
        compiler_params=pltpu.CompilerParams(
            dimension_semantics=("parallel", "arbitrary"),
            vmem_limit_bytes=vmem_limit,
        ),
        cost_estimate=cost,
    )(a2, a2, *pos2)

    return jnp.sum(out)   # tiny XLA reduction of per-row partial losses


def icl_loss_ref(anchor, positives_list, temperature=1.0, eps=1e-8):
    """Pure-JAX reference mirroring the PyTorch module exactly."""
    b = anchor.shape[0]
    a = anchor.reshape(b, -1).astype(jnp.float32)
    g = a @ a.T
    n = jnp.sqrt(jnp.sum(a ** 2, -1))
    neg = g / (n[:, None] @ n[None, :]) / temperature
    neg = neg * (1.0 - jnp.eye(b, dtype=jnp.float32))
    pos_scores = []
    for pp in positives_list:
        p = pp.reshape(b, -1).astype(jnp.float32)
        pn = jnp.sqrt(jnp.sum(p ** 2, -1))
        cs = jnp.sum(a * p, -1) / jnp.maximum(n * pn, eps)
        pos_scores.append(cs / temperature)
    pos = jnp.stack(pos_scores, axis=1)
    nominator = jax.scipy.special.logsumexp(pos, axis=-1)
    denominator = jax.scipy.special.logsumexp(neg, axis=-1)
    return jnp.sum(-nominator + denominator) / b


if __name__ == "__main__":
    key = jax.random.PRNGKey(0)
    k_a, k_p, k_a2, k_p2 = jax.random.split(key, 4)

    # Small shapes consistent with the module: anchor (B, C, H) flattened to D.
    B, C, H = 8, 4, 32        # D = 128
    P = 3                     # number of positives in positives_list
    temperature = 0.5

    anchor = jax.random.normal(k_a, (B, C, H), dtype=jnp.float32)
    positives = [jax.random.normal(k, (B, C, H), dtype=jnp.float32)
                 for k in jax.random.split(k_p, P)]

    loss = jax.block_until_ready(icl_loss(anchor, positives, temperature=temperature))
    ref = icl_loss_ref(anchor, positives, temperature=temperature)
    assert jnp.allclose(loss, ref, rtol=2e-3, atol=2e-3), (loss, ref)

    # Exercise the multi-block (gridded, streaming-logsumexp, partial-loss) path.
    B2 = 16
    anchor2 = jax.random.normal(k_a2, (B2, C, H), dtype=jnp.float32)
    positives2 = [jax.random.normal(k, (B2, C, H), dtype=jnp.float32)
                  for k in jax.random.split(k_p2, P)]
    loss2 = jax.block_until_ready(
        icl_loss(anchor2, positives2, temperature=temperature, block_rows=8))
    ref2 = icl_loss_ref(anchor2, positives2, temperature=temperature)
    assert jnp.allclose(loss2, ref2, rtol=2e-3, atol=2e-3), (loss2, ref2)

    print("KERNEL_OK")
</pallas_src>

<mosaic_0001>
module attributes {stable_mosaic.version = 11 : i64} {
  func.func @kernel(%arg0: i32, %arg1: i32, %arg2: memref<8x128xf32, #tpu.memory_space<vmem>>, %arg3: memref<8x128xf32, #tpu.memory_space<vmem>>, %arg4: memref<8x128xf32, #tpu.memory_space<vmem>>, %arg5: memref<8x128xf32, #tpu.memory_space<vmem>>, %arg6: memref<8x128xf32, #tpu.memory_space<vmem>>, %arg7: memref<8x1xf32, #tpu.memory_space<vmem>>, %arg8: memref<8x1xf32, #tpu.memory_space<vmem>>, %arg9: memref<8x1xf32, #tpu.memory_space<vmem>>, %arg10: memref<8x1xf32, #tpu.memory_space<vmem>>, %arg11: memref<8x1xf32, #tpu.memory_space<vmem>>) attributes {dimension_semantics = [#tpu.dimension_semantics<parallel>, #tpu.dimension_semantics<arbitrary>], iteration_bounds = array<i64: 1, 1>, scalar_prefetch = 0 : i64, scratch_operands = 4 : i64, tpu.core_type = #tpu.core_type<tc>, window_params = [{transform_indices = @transform_0, window_bounds = array<i64: 8, 128>}, {transform_indices = @transform_1, window_bounds = array<i64: 8, 128>}, {transform_indices = @transform_2, window_bounds = array<i64: 8, 128>}, {transform_indices = @transform_3, window_bounds = array<i64: 8, 128>}, {transform_indices = @transform_4, window_bounds = array<i64: 8, 128>}, {transform_indices = @transform_5, window_bounds = array<i64: 8, 1>}]} {
    %c0 = arith.constant 0 : index
    %c0_0 = arith.constant 0 : index
    %0 = vector.load %arg2[%c0, %c0_0] : memref<8x128xf32, #tpu.memory_space<vmem>>, vector<8x128xf32>
    %c0_1 = arith.constant 0 : index
    %c0_2 = arith.constant 0 : index
    %1 = vector.load %arg3[%c0_1, %c0_2] : memref<8x128xf32, #tpu.memory_space<vmem>>, vector<8x128xf32>
    %c0_i32 = arith.constant 0 : i32
    %2 = arith.cmpi eq, %arg1, %c0_i32 : i32
    %3 = arith.extui %2 : i1 to i32
    %c0_i32_3 = arith.constant 0 : i32
    %4 = arith.cmpi ne, %3, %c0_i32_3 : i32
    scf.if %4 {
      %47 = arith.mulf %0, %0 : vector<8x128xf32>
      %cst_23 = arith.constant dense<0.000000e+00> : vector<8xf32>
      %48 = vector.multi_reduction <add>, %47, %cst_23 [1] : vector<8x128xf32> to vector<8xf32>
      %49 = vector.shape_cast %48 : vector<8xf32> to vector<8x1xf32>
      %50 = math.rsqrt %49 : vector<8x1xf32>
      %cst_24 = arith.constant 2.000000e+00 : f32
      %51 = vector.broadcast %cst_24 : f32 to vector<8x1xf32>
      %52 = arith.mulf %50, %51 : vector<8x1xf32>
      %c0_25 = arith.constant 0 : index
      %c0_26 = arith.constant 0 : index
      %53 = vector.load %arg8[%c0_25, %c0_26] : memref<8x1xf32, #tpu.memory_space<vmem>>, vector<8x1xf32>
      tpu.vector_store %arg8[%c0_25, %c0_26], %52 {strides = array<i32>} : memref<8x1xf32, #tpu.memory_space<vmem>>, vector<8x1xf32>,
      %c0_27 = arith.constant 0 : index
      %c0_28 = arith.constant 0 : index
      %54 = vector.load %arg4[%c0_27, %c0_28] : memref<8x128xf32, #tpu.memory_space<vmem>>, vector<8x128xf32>
      %55 = arith.mulf %0, %54 : vector<8x128xf32>
      %cst_29 = arith.constant dense<0.000000e+00> : vector<8xf32>
      %56 = vector.multi_reduction <add>, %55, %cst_29 [1] : vector<8x128xf32> to vector<8xf32>
      %57 = vector.shape_cast %56 : vector<8xf32> to vector<8x1xf32>
      %58 = arith.mulf %54, %54 : vector<8x128xf32>
      %cst_30 = arith.constant dense<0.000000e+00> : vector<8xf32>
      %59 = vector.multi_reduction <add>, %58, %cst_30 [1] : vector<8x128xf32> to vector<8xf32>
      %60 = vector.shape_cast %59 : vector<8xf32> to vector<8x1xf32>
      %61 = math.rsqrt %60 : vector<8x1xf32>
      %62 = arith.mulf %50, %61 : vector<8x1xf32>
      %cst_31 = arith.constant 1.000000e+08 : f32
      %63 = vector.broadcast %cst_31 : f32 to vector<8x1xf32>
      %64 = arith.minimumf %62, %63 : vector<8x1xf32>
      %65 = arith.mulf %57, %64 : vector<8x1xf32>
      %cst_32 = arith.constant 2.000000e+00 : f32
      %66 = vector.broadcast %cst_32 : f32 to vector<8x1xf32>
      %67 = arith.mulf %65, %66 : vector<8x1xf32>
      %cst_33 = arith.constant 1.000000e+00 : f32
      %68 = vector.broadcast %cst_33 : f32 to vector<8x1xf32>
      %c0_34 = arith.constant 0 : index
      %c0_35 = arith.constant 0 : index
      %69 = vector.load %arg5[%c0_34, %c0_35] : memref<8x128xf32, #tpu.memory_space<vmem>>, vector<8x128xf32>
      %70 = arith.mulf %0, %69 : vector<8x128xf32>
      %cst_36 = arith.constant dense<0.000000e+00> : vector<8xf32>
      %71 = vector.multi_reduction <add>, %70, %cst_36 [1] : vector<8x128xf32> to vector<8xf32>
      %72 = vector.shape_cast %71 : vector<8xf32> to vector<8x1xf32>
      %73 = arith.mulf %69, %69 : vector<8x128xf32>
      %cst_37 = arith.constant dense<0.000000e+00> : vector<8xf32>
      %74 = vector.multi_reduction <add>, %73, %cst_37 [1] : vector<8x128xf32> to vector<8xf32>
      %75 = vector.shape_cast %74 : vector<8xf32> to vector<8x1xf32>
      %76 = math.rsqrt %75 : vector<8x1xf32>
      %77 = arith.mulf %50, %76 : vector<8x1xf32>
      %cst_38 = arith.constant 1.000000e+08 : f32
      %78 = vector.broadcast %cst_38 : f32 to vector<8x1xf32>
      %79 = arith.minimumf %77, %78 : vector<8x1xf32>
      %80 = arith.mulf %72, %79 : vector<8x1xf32>
      %cst_39 = arith.constant 2.000000e+00 : f32
      %81 = vector.broadcast %cst_39 : f32 to vector<8x1xf32>
      %82 = arith.mulf %80, %81 : vector<8x1xf32>
      %83 = arith.maximumf %67, %82 : vector<8x1xf32>
      %84 = arith.subf %67, %83 : vector<8x1xf32>
      %85 = math.exp %84 : vector<8x1xf32>
      %86 = arith.mulf %68, %85 : vector<8x1xf32>
      %87 = arith.subf %82, %83 : vector<8x1xf32>
      %88 = math.exp %87 : vector<8x1xf32>
      %89 = arith.addf %86, %88 : vector<8x1xf32>
      %c0_40 = arith.constant 0 : index
      %c0_41 = arith.constant 0 : index
      %90 = vector.load %arg6[%c0_40, %c0_41] : memref<8x128xf32, #tpu.memory_space<vmem>>, vector<8x128xf32>
      %91 = arith.mulf %0, %90 : vector<8x128xf32>
      %cst_42 = arith.constant dense<0.000000e+00> : vector<8xf32>
      %92 = vector.multi_reduction <add>, %91, %cst_42 [1] : vector<8x128xf32> to vector<8xf32>
      %93 = vector.shape_cast %92 : vector<8xf32> to vector<8x1xf32>
      %94 = arith.mulf %90, %90 : vector<8x128xf32>
      %cst_43 = arith.constant dense<0.000000e+00> : vector<8xf32>
      %95 = vector.multi_reduction <add>, %94, %cst_43 [1] : vector<8x128xf32> to vector<8xf32>
      %96 = vector.shape_cast %95 : vector<8xf32> to vector<8x1xf32>
      %97 = math.rsqrt %96 : vector<8x1xf32>
      %98 = arith.mulf %50, %97 : vector<8x1xf32>
      %cst_44 = arith.constant 1.000000e+08 : f32
      %99 = vector.broadcast %cst_44 : f32 to vector<8x1xf32>
      %100 = arith.minimumf %98, %99 : vector<8x1xf32>
      %101 = arith.mulf %93, %100 : vector<8x1xf32>
      %cst_45 = arith.constant 2.000000e+00 : f32
      %102 = vector.broadcast %cst_45 : f32 to vector<8x1xf32>
      %103 = arith.mulf %101, %102 : vector<8x1xf32>
      %104 = arith.maximumf %83, %103 : vector<8x1xf32>
      %105 = arith.subf %83, %104 : vector<8x1xf32>
      %106 = math.exp %105 : vector<8x1xf32>
      %107 = arith.mulf %89, %106 : vector<8x1xf32>
      %108 = arith.subf %103, %104 : vector<8x1xf32>
      %109 = math.exp %108 : vector<8x1xf32>
      %110 = arith.addf %107, %109 : vector<8x1xf32>
      %111 = math.log %110 : vector<8x1xf32>
      %112 = arith.addf %104, %111 : vector<8x1xf32>
      %c0_46 = arith.constant 0 : index
      %c0_47 = arith.constant 0 : index
      %113 = vector.load %arg9[%c0_46, %c0_47] : memref<8x1xf32, #tpu.memory_space<vmem>>, vector<8x1xf32>
      tpu.vector_store %arg9[%c0_46, %c0_47], %112 {strides = array<i32>} : memref<8x1xf32, #tpu.memory_space<vmem>>, vector<8x1xf32>,
      %cst_48 = arith.constant 0xFF800000 : f32
      %114 = vector.broadcast %cst_48 : f32 to vector<8x1xf32>
      %c0_49 = arith.constant 0 : index
      %c0_50 = arith.constant 0 : index
      %115 = vector.load %arg10[%c0_49, %c0_50] : memref<8x1xf32, #tpu.memory_space<vmem>>, vector<8x1xf32>
      tpu.vector_store %arg10[%c0_49, %c0_50], %114 {strides = array<i32>} : memref<8x1xf32, #tpu.memory_space<vmem>>, vector<8x1xf32>,
      %cst_51 = arith.constant 0.000000e+00 : f32
      %116 = vector.broadcast %cst_51 : f32 to vector<8x1xf32>
      %c0_52 = arith.constant 0 : index
      %c0_53 = arith.constant 0 : index
      %117 = vector.load %arg11[%c0_52, %c0_53] : memref<8x1xf32, #tpu.memory_space<vmem>>, vector<8x1xf32>
      tpu.vector_store %arg11[%c0_52, %c0_53], %116 {strides = array<i32>} : memref<8x1xf32, #tpu.memory_space<vmem>>, vector<8x1xf32>,
    } else {
    }
    %cst = arith.constant dense<0.000000e+00> : vector<8x8xf32>
    %5 = tpu.matmul %0, %1, %cst {dimension_numbers = #tpu.dot_dimension_numbers<[1], [1], [0], [0], [0, 0, 1, 0], [], []>} : vector<8x128xf32>, vector<8x128xf32>, vector<8x8xf32> -> vector<8x8xf32>
    %6 = arith.mulf %1, %1 : vector<8x128xf32>
    %cst_4 = arith.constant dense<0.000000e+00> : vector<8xf32>
    %7 = vector.multi_reduction <add>, %6, %cst_4 [1] : vector<8x128xf32> to vector<8xf32>
    %8 = vector.shape_cast %7 : vector<8xf32> to vector<8x1xf32>
    %9 = math.rsqrt %8 : vector<8x1xf32>
    %c0_5 = arith.constant 0 : index
    %c0_6 = arith.constant 0 : index
    %10 = vector.load %arg8[%c0_5, %c0_6] : memref<8x1xf32, #tpu.memory_space<vmem>>, vector<8x1xf32>
    %11 = vector.broadcast %10 : vector<8x1xf32> to vector<8x8xf32>
    %12 = arith.mulf %5, %11 : vector<8x8xf32>
    %13 = tpu.transpose %9, [1, 0] : vector<8x1xf32> -> vector<1x8xf32>
    %14 = vector.broadcast %13 : vector<1x8xf32> to vector<8x8xf32>
    %15 = arith.mulf %12, %14 : vector<8x8xf32>
    %16 = tpu.iota {dimensions = array<i32: 0>} : vector<8x8xi32>
    %c8_i32 = arith.constant 8 : i32
    %17 = arith.muli %arg0, %c8_i32 : i32
    %18 = vector.broadcast %17 : i32 to vector<8x8xi32>
    %19 = arith.addi %16, %18 : vector<8x8xi32>
    %20 = tpu.iota {dimensions = array<i32: 1>} : vector<8x8xi32>
    %c8_i32_7 = arith.constant 8 : i32
    %21 = arith.muli %arg1, %c8_i32_7 : i32
    %22 = vector.broadcast %21 : i32 to vector<8x8xi32>
    %23 = arith.addi %20, %22 : vector<8x8xi32>
    %24 = arith.cmpi eq, %19, %23 : vector<8x8xi32>
    %cst_8 = arith.constant 0.000000e+00 : f32
    %25 = vector.broadcast %cst_8 : f32 to vector<8x8xf32>
    %26 = arith.select %24, %25, %15 : vector<8x8xi1>, vector<8x8xf32>
    %c0_9 = arith.constant 0 : index
    %c0_10 = arith.constant 0 : index
    %27 = vector.load %arg10[%c0_9, %c0_10] : memref<8x1xf32, #tpu.memory_space<vmem>>, vector<8x1xf32>
    %cst_11 = arith.constant dense<0xFF800000> : vector<8xf32>
    %28 = vector.multi_reduction <maximumf>, %26, %cst_11 [1] : vector<8x8xf32> to vector<8xf32>
    %29 = vector.shape_cast %28 : vector<8xf32> to vector<8x1xf32>
    %30 = arith.maximumf %27, %29 : vector<8x1xf32>
    %c0_12 = arith.constant 0 : index
    %c0_13 = arith.constant 0 : index
    %31 = vector.load %arg11[%c0_12, %c0_13] : memref<8x1xf32, #tpu.memory_space<vmem>>, vector<8x1xf32>
    %c0_14 = arith.constant 0 : index
    %c0_15 = arith.constant 0 : index
    %32 = vector.load %arg10[%c0_14, %c0_15] : memref<8x1xf32, #tpu.memory_space<vmem>>, vector<8x1xf32>
    %33 = arith.subf %32, %30 : vector<8x1xf32>
    %34 = math.exp %33 : vector<8x1xf32>
    %35 = arith.mulf %31, %34 : vector<8x1xf32>
    %36 = vector.broadcast %30 : vector<8x1xf32> to vector<8x8xf32>
    %37 = arith.subf %26, %36 : vector<8x8xf32>
    %38 = math.exp %37 : vector<8x8xf32>
    %cst_16 = arith.constant dense<0.000000e+00> : vector<8xf32>
    %39 = vector.multi_reduction <add>, %38, %cst_16 [1] : vector<8x8xf32> to vector<8xf32>
    %40 = vector.shape_cast %39 : vector<8xf32> to vector<8x1xf32>
    %41 = arith.addf %35, %40 : vector<8x1xf32>
    %c0_17 = arith.constant 0 : index
    %c0_18 = arith.constant 0 : index
    %42 = vector.load %arg11[%c0_17, %c0_18] : memref<8x1xf32, #tpu.memory_space<vmem>>, vector<8x1xf32>
    tpu.vector_store %arg11[%c0_17, %c0_18], %41 {strides = array<i32>} : memref<8x1xf32, #tpu.memory_space<vmem>>, vector<8x1xf32>,
    %c0_19 = arith.constant 0 : index
    %c0_20 = arith.constant 0 : index
    %43 = vector.load %arg10[%c0_19, %c0_20] : memref<8x1xf32, #tpu.memory_space<vmem>>, vector<8x1xf32>
    tpu.vector_store %arg10[%c0_19, %c0_20], %30 {strides = array<i32>} : memref<8x1xf32, #tpu.memory_space<vmem>>, vector<8x1xf32>,
    %c0_i32_21 = arith.constant 0 : i32
    %44 = arith.cmpi eq, %arg1, %c0_i32_21 : i32
    %45 = arith.extui %44 : i1 to i32
    %c0_i32_22 = arith.constant 0 : i32
    %46 = arith.cmpi ne, %45, %c0_i32_22 : i32
    scf.if %46 {
      %c0_23 = arith.constant 0 : index
      %c0_24 = arith.constant 0 : index
      %47 = vector.load %arg10[%c0_23, %c0_24] : memref<8x1xf32, #tpu.memory_space<vmem>>, vector<8x1xf32>
      %c0_25 = arith.constant 0 : index
      %c0_26 = arith.constant 0 : index
      %48 = vector.load %arg11[%c0_25, %c0_26] : memref<8x1xf32, #tpu.memory_space<vmem>>, vector<8x1xf32>
      %49 = math.log %48 : vector<8x1xf32>
      %50 = arith.addf %47, %49 : vector<8x1xf32>
      %c0_27 = arith.constant 0 : index
      %c0_28 = arith.constant 0 : index
      %51 = vector.load %arg9[%c0_27, %c0_28] : memref<8x1xf32, #tpu.memory_space<vmem>>, vector<8x1xf32>
      %52 = arith.subf %50, %51 : vector<8x1xf32>
      %cst_29 = arith.constant 1.250000e-01 : f32
      %53 = vector.broadcast %cst_29 : f32 to vector<8x1xf32>
      %54 = arith.mulf %52, %53 : vector<8x1xf32>
      %c0_30 = arith.constant 0 : index
      %c0_31 = arith.constant 0 : index
      %55 = vector.load %arg7[%c0_30, %c0_31] : memref<8x1xf32, #tpu.memory_space<vmem>>, vector<8x1xf32>
      tpu.vector_store %arg7[%c0_30, %c0_31], %54 {strides = array<i32>} : memref<8x1xf32, #tpu.memory_space<vmem>>, vector<8x1xf32>,
    } else {
    }
    return
  }
  func.func @transform_0(%arg0: i32, %arg1: i32) -> (i32, i32) {
    %c0_i32 = arith.constant 0 : i32
    %c0_i32_0 = arith.constant 0 : i32
    return %arg0, %c0_i32 : i32, i32
  }
  func.func @transform_1(%arg0: i32, %arg1: i32) -> (i32, i32) {
    %c0_i32 = arith.constant 0 : i32
    %c0_i32_0 = arith.constant 0 : i32
    return %arg1, %c0_i32 : i32, i32
  }
  func.func @transform_2(%arg0: i32, %arg1: i32) -> (i32, i32) {
    %c0_i32 = arith.constant 0 : i32
    %c0_i32_0 = arith.constant 0 : i32
    return %arg0, %c0_i32 : i32, i32
  }
  func.func @transform_3(%arg0: i32, %arg1: i32) -> (i32, i32) {
    %c0_i32 = arith.constant 0 : i32
    %c0_i32_0 = arith.constant 0 : i32
    return %arg0, %c0_i32 : i32, i32
  }
  func.func @transform_4(%arg0: i32, %arg1: i32) -> (i32, i32) {
    %c0_i32 = arith.constant 0 : i32
    %c0_i32_0 = arith.constant 0 : i32
    return %arg0, %c0_i32 : i32, i32
  }
  func.func @transform_5(%arg0: i32, %arg1: i32) -> (i32, i32) {
    %c0_i32 = arith.constant 0 : i32
    %c0_i32_0 = arith.constant 0 : i32
    return %arg0, %c0_i32 : i32, i32
  }
}

</mosaic_0001>

<bundles_post_ra>
// kernel: tpu_custom_call.1
= control target key start
LH: loop header
LB: loop body
LE: loop exit
PB: predicated region body
PF: predicated region fallthrough
CT: control target
= control target key end

     0   :  { %10 = vsyncpa [#allocation7], 0  ;;  %s559_s0 = inlined_call_operand.hbm [shape: f32[8,128], index: 0, kind: input, shape index: {}]   ;;  %s560_s1 = inlined_call_operand.hbm [shape: f32[8,128], index: 1, kind: input, shape index: {}]   ;;  %s561_s2 = inlined_call_operand.hbm [shape: f32[8,128], index: 2, kind: input, shape index: {}]   ;;  %s562_s3 = inlined_call_operand.hbm [shape: f32[8,128], index: 3, kind: input, shape index: {}]   ;;  %s563_s4 = inlined_call_operand.hbm [shape: f32[8,128], index: 4, kind: input, shape index: {}]   ;;  %s564_s5 = inlined_call_operand.vmem [shape: f32[8,1], index: 5, kind: output, shape index: {}]  }
   0x1   :  { %11 = vsyncpa [#allocation9], 0 }
   0x2   :  { %12 = vsyncpa [#allocation12], 0  ;;  %s475_s18 = smov [#allocation8]   ;;  %s476_s20 = smov [#allocation11]  }
   0x3   :  { %s29_s19 = sshll.u32 %s475_s18, 4  ;;  %s49_s21 = sshll.u32 %s476_s20, 4  ;;  %s30_s19 = int_to_ptr.vmem [resolvable:$true] %s29_s19  ;;  %s50_s21 = int_to_ptr.vmem [resolvable:$true] %s49_s21 }
   0x4   :  { %s377_s22 = scalar_lea.vmem %s30_s19, 128  ;;  %p382_p1 = scmp.lt.s32.totalorder %s30_s19, %s30_s19 }
   0x5   :  { %p378_p0 = scmp.ne.s32.totalorder %s30_s19, %s377_s22  ;;  %p383_p2 = scmp.lt.s32.totalorder %s377_s22, %s377_s22 }
   0x7   :  { %p384_p3 = por %p383_p2, %p382_p1 }
   0x9   :  { %p385_p4 = pnand %p384_p3, %p378_p0 }
   0xb   :  { %388 = shalt.err (!%p385_p4)
}
   0xc   :  { %32 = dma.hbm_to_vmem [thread:$0]  %s560_s1, 128, %s30_s19, [#allocation9]  }
   0xd   :  { %s397_s25 = scalar_lea.vmem %s50_s21, 128  ;;  %p402_p6 = scmp.lt.s32.totalorder %s50_s21, %s50_s21 }
   0xe   :  { %p398_p5 = scmp.ne.s32.totalorder %s50_s21, %s397_s25  ;;  %p403_p7 = scmp.lt.s32.totalorder %s397_s25, %s397_s25 }
  0x10   :  { %p404_p8 = por %p403_p7, %p402_p6 }
  0x12   :  { %p405_p9 = pnand %p404_p8, %p398_p5 }
  0x14   :  { %408 = shalt.err (!%p405_p9)
}
  0x15   :  { %52 = dma.hbm_to_vmem [thread:$0]  %s562_s3, 128, %s50_s21, [#allocation12]  }
  0x16   :  { %s477_s28 = smov [#allocation6]   ;;  %s478_s30 = smov [#allocation10]  }
  0x17   :  { %s19_s29 = sshll.u32 %s477_s28, 4  ;;  %s39_s6 = sshll.u32 %s478_s30, 4  ;;  %s20_s29 = int_to_ptr.vmem [resolvable:$true] %s19_s29  ;;  %s40_s6 = int_to_ptr.vmem [resolvable:$true] %s39_s6 }
  0x18   :  { %s417_s7 = scalar_lea.vmem %s20_s29, 128  ;;  %p422_p11 = scmp.lt.s32.totalorder %s20_s29, %s20_s29 }
  0x19   :  { %p418_p10 = scmp.ne.s32.totalorder %s20_s29, %s417_s7  ;;  %p423_p12 = scmp.lt.s32.totalorder %s417_s7, %s417_s7 }
  0x1b   :  { %p424_p13 = por %p423_p12, %p422_p11 }
  0x1d   :  { %p425_p0 = pnand %p424_p13, %p418_p10 }
  0x1f   :  { %428 = shalt.err (!%p425_p0)
}
  0x20   :  { %22 = dma.hbm_to_vmem [thread:$0]  %s559_s0, 128, %s20_s29, [#allocation7]  }
  0x21   :  { %s437_s9 = scalar_lea.vmem %s40_s6, 128  ;;  %p442_p2 = scmp.lt.s32.totalorder %s40_s6, %s40_s6 }
  0x22   :  { %p438_p1 = scmp.ne.s32.totalorder %s40_s6, %s437_s9  ;;  %p443_p3 = scmp.lt.s32.totalorder %s437_s9, %s437_s9 }
  0x24   :  { %p444_p4 = por %p443_p3, %p442_p2 }
  0x26   :  { %p445_p5 = pnand %p444_p4, %p438_p1 }
  0x28   :  { %448 = shalt.err (!%p445_p5)
}
  0x29   :  { %42 = dma.hbm_to_vmem [thread:$0]  %s561_s2, 128, %s40_s6, [#allocation9]  }
  0x2a   :  { %s479_s11 = smov [#allocation13]  }
  0x2b   :  { %s59_s12 = sshll.u32 %s479_s11, 4  ;;  %s60_s12 = int_to_ptr.vmem [resolvable:$true] %s59_s12 }
  0x2c   :  { %s457_s13 = scalar_lea.vmem %s60_s12, 128  ;;  %p462_p7 = scmp.lt.s32.totalorder %s60_s12, %s60_s12 }
  0x2d   :  { %p458_p6 = scmp.ne.s32.totalorder %s60_s12, %s457_s13  ;;  %p463_p8 = scmp.lt.s32.totalorder %s457_s13, %s457_s13 }
  0x2f   :  { %p464_p9 = por %p463_p8, %p462_p7 }
  0x31   :  { %p465_p10 = pnand %p464_p9, %p458_p6 }
  0x33   :  { %468 = shalt.err (!%p465_p10)
}
  0x34   :  { %62 = dma.hbm_to_vmem [thread:$0]  %s563_s4, 128, %s60_s12, [#allocation12]  }
  0x35   :  { %469 = dma.done.wait [#allocation7], 128  }
  0x36   :  { %470 = vsyncadd [#allocation7], 4294967168 }
  0x37   :  { %471 = dma.done.wait [#allocation9], 256  }
  0x38   :  { %472 = vsyncadd [#allocation9], 4294967040 }
  0x39   :  { %473 = dma.done.wait [#allocation12], 256  }
  0x3a   :  { %474 = vsyncadd [#allocation12], 4294967040  ;;  %vm89_vm0 = vcmask 7168   ;;  %v480_v0 = vmov 0.0   ;;  %vm481_vm1 = vmmov 0   ;;  %v78_v1 = vld [vmem:[#allocation6] sm:$0xff]  ;;  %v263_v19 = vlaneseq }
  0x3b   :  { %149 = vst.msk [vmem:[#allocation5] sm:$0xff] %vm89_vm0, %v480_v0  ;;  %327 = vmatprep.subr.mxu0 %v480_v0  ;;  %329 = vmatprep.mubr.msk.f32.mxu0 %vm481_vm1, %v480_v0  ;;  %v79_v2 = vld [vmem:[#allocation8] sm:$0xff]  ;;  %v84_v3 = vmul.f32 %v78_v1, %v78_v1  ;;  %v482_v5 = vmov 0   ;;  %v91_v14 = vld [vmem:[#allocation10] sm:$0xff]  ;;  %v123_v16 = vld [vmem:[#allocation13] sm:$0xff]  ;;  %v483_v18 = vmov -inf  }
  0x3c   :  { %328 = vmatpush3.xpose.msra.mxu0 %v79_v2  ;;  %v220_v4 = vmul.f32 %v79_v2, %v79_v2  ;;  %341 = vset.pattern.permute.xlu1 %v482_v5  ;;  %v95_v15 = vmul.f32 %v91_v14, %v91_v14  ;;  %v127_v17 = vmul.f32 %v123_v16, %v123_v16  ;;  %v264_v20 = vshrl.u32 %v263_v19, 7  ;;  %v103_v30 = vld [vmem:[#allocation11] sm:$0xff] }
  0x3d   :  { %85 = vadd.xlane.f32.xlu0 %v84_v3  ;;  %148 = vst.msk [vmem:[#allocation4] sm:$0xff] %vm89_vm0, %v483_v18  ;;  %v274_v23 = vand.u32 127, %v263_v19  ;;  %vm281_vm3 = vcmask 64512   ;;  %v104_v31 = vmul.f32 %v103_v30, %v78_v1  ;;  %v107_v36 = vmul.f32 %v103_v30, %v103_v30 }
  0x3e   :  { %342 = vset.pattern.permute.xlu0 %v482_v5  ;;  %v265_v22 = vsub.s32 0, %v264_v20  ;;  %v92_v37 = vmul.f32 %v91_v14, %v78_v1  ;;  %v124_v38 = vmul.f32 %v123_v16, %v78_v1 }
  0x3f   :  { %330 = vmatmul.mubr.f32.vlgmr.msra.gmra.mxu0 %v78_v1  ;;  %vm278_vm2 = vcmp.eq.s32.totalorder %v264_v20, %v274_v23 }
  0x41   :  { %221 = vadd.xlane.f32.xlu0 %v220_v4 }
  0x42   :  { %v286_v23 = vld [vmem:[#allocation5] sm:$0xff] }
  0x44   :  { %v536_v32 = vld [vmem:[#allocation4] sm:$0xff] }
  0xc6   :  { %v86_v6 = vpop.xlane.xlu0 %85 }
  0xc7   :  { %343 = vrsqrt.f32 %v86_v6 }
  0xca   :  { %v222_v10 = vpop.xlane.xlu0 %221 }
  0xcb   :  { %345 = vrsqrt.f32 %v222_v10 }
  0xd4   :  { %v530_v7 = vpop.eup %343 }
  0xd5   :  { %v88_v8 = vmul.f32 2.0, %v530_v7 }
  0xd7   :  { %90 = vst.msk [vmem:[#allocation2] sm:$0xff] %vm89_vm0, %v88_v8 }
  0xd8   :  { %v346_v13 = vpop.eup %345 }
  0xde   :  { %v224_v9 = vld [vmem:[#allocation2] sm:$0xff] }
  0xdf   :  { %227 = vperm.xlu1 %341, %v224_v9  }
  0xff   :  { %v216_v11 = vpop.f32.mrf.mxu0 }
 0x101   :  { %v331_v12 = vpop.f32.mrf.mxu0 }
 0x108   :  { %231 = vxpose.xlu1.b32.start.end [1/1] (short) (narrow) %v346_v13, 8 }
 0x12f   :  { %96 = vadd.xlane.f32.xlu1 %v95_v15 }
 0x133   :  { %128 = vadd.xlane.f32.xlu1 %v127_v17 }
 0x137   :  { %105 = vadd.xlane.f32.xlu1 %v104_v31 }
 0x15a   :  { %v228_v21 = vpop.permute.xlu1 %227 }
 0x15b   :  { %v230_v25 = vmul.f32 %v228_v21, %v216_v11 }
 0x184   :  { %v247_v24 = vpop.trf.xlu1 }
 0x185   :  { %v266_v26 = vrot.slane %v247_v24, %v265_v22 }
 0x187   :  { %v267_v27 = vmul.f32 %v266_v26, %v230_v25 }
 0x189   :  { %v279_v28 = vsel %vm278_vm2, 0.0, %v267_v27 }
 0x18a   :  { %v282_v29 = vsel %vm281_vm3, %v279_v28, -inf }
 0x18b   :  { %283 = vmax.xlane.f32.xlu0 %v282_v29 }
 0x1b8   :  { %v97_v44 = vpop.xlane.xlu1 %96 }
 0x1bc   :  { %v129_v45 = vpop.xlane.xlu1 %128 }
 0x1c0   :  { %v106_v56 = vpop.xlane.xlu1 %105 }
 0x214   :  { %v284_v33 = vpop.xlane.xlu0 %283 }
 0x215   :  { %v539_v34 = vmax.f32 %v536_v32, %v284_v33 }
 0x217   :  { %v287_v35 = vsub.f32 %v536_v32, %v539_v34  ;;  %305 = vst.msk [vmem:[#allocation4] sm:$0xff] %vm89_vm0, %v539_v34  ;;  %293 = vperm.xlu0 %342, %v539_v34  }
 0x219   :  { %v288_v21 = vmul.f32 1.442695, %v287_v35 }
 0x21e   :  { %v309_v30 = vld [vmem:[#allocation4] sm:$0xff] }
 0x236   :  { %108 = vadd.xlane.f32.xlu0 %v107_v36 }
 0x23a   :  { %93 = vadd.xlane.f32.xlu0 %v92_v37 }
 0x23e   :  { %125 = vadd.xlane.f32.xlu0 %v124_v38 }
 0x292   :  { %v294_v39 = vpop.permute.xlu0 %293 }
 0x293   :  { %v296_v40 = vsub.f32 %v279_v28, %v294_v39 }
 0x295   :  { %v297_v41 = vmul.f32 1.442695, %v296_v40 }
 0x297   :  { %347 = vpow2.f32 %v297_v41 }
 0x298   :  { %349 = vrsqrt.f32 %v97_v44 }
 0x299   :  { %351 = vrsqrt.f32 %v129_v45 }
 0x2a4   :  { %v348_v42 = vpop.eup %347 }
 0x2a5   :  { %v299_v43 = vsel %vm281_vm3, %v348_v42, 0.0  ;;  %v350_v47 = vpop.eup %349 }
 0x2a6   :  { %300 = vadd.xlane.f32.xlu1 %v299_v43  ;;  %v352_v48 = vpop.eup %351  ;;  %v99_v50 = vmul.f32 %v350_v47, %v530_v7 }
 0x2a7   :  { %v131_v51 = vmul.f32 %v352_v48, %v530_v7 }
 0x2a8   :  { %v100_v53 = vmin.f32 %v99_v50, 1e+08 }
 0x2a9   :  { %v132_v58 = vmin.f32 %v131_v51, 1e+08 }
 0x2bf   :  { %v109_v46 = vpop.xlane.xlu0 %108 }
 0x2c0   :  { %353 = vrsqrt.f32 %v109_v46 }
 0x2c3   :  { %v94_v49 = vpop.xlane.xlu0 %93 }
 0x2c4   :  { %v101_v57 = vmul.f32 %v100_v53, %v94_v49 }
 0x2c6   :  { %v102_v62 = vmul.f32 2.0, %v101_v57 }
 0x2c7   :  { %v126_v55 = vpop.xlane.xlu0 %125 }
 0x2c8   :  { %v133_v60 = vmul.f32 %v132_v58, %v126_v55 }
 0x2ca   :  { %v134_v0 = vmul.f32 2.0, %v133_v60 }
 0x2cd   :  { %v354_v52 = vpop.eup %353 }
 0x2ce   :  { %v111_v54 = vmul.f32 %v354_v52, %v530_v7 }
 0x2d0   :  { %v112_v59 = vmin.f32 %v111_v54, 1e+08 }
 0x2d2   :  { %v113_v61 = vmul.f32 %v112_v59, %v106_v56 }
 0x2d4   :  { %v114_v63 = vmul.f32 2.0, %v113_v61 }
 0x2d6   :  { %v115_v1 = vmax.f32 %v102_v62, %v114_v63 }
 0x2d8   :  { %v116_v2 = vsub.f32 %v102_v62, %v115_v1  ;;  %v119_v3 = vsub.f32 %v114_v63, %v115_v1  ;;  %v135_v4 = vmax.f32 %v115_v1, %v134_v0 }
 0x2da   :  { %v117_v5 = vmul.f32 1.442695, %v116_v2  ;;  %v120_v6 = vmul.f32 1.442695, %v119_v3  ;;  %v136_v8 = vsub.f32 %v115_v1, %v135_v4  ;;  %v140_v9 = vsub.f32 %v134_v0, %v135_v4 }
 0x2dc   :  { %355 = vpow2.f32 %v117_v5  ;;  %v137_v7 = vmul.f32 1.442695, %v136_v8  ;;  %v141_v10 = vmul.f32 1.442695, %v140_v9 }
 0x2dd   :  { %357 = vpow2.f32 %v120_v6 }
 0x2de   :  { %359 = vpow2.f32 %v137_v7 }
 0x2df   :  { %361 = vpow2.f32 %v141_v10 }
 0x2e9   :  { %v356_v11 = vpop.eup %355 }
 0x2ea   :  { %v358_v12 = vpop.eup %357 }
 0x2eb   :  { %v360_v13 = vpop.eup %359  ;;  %v122_v14 = vadd.f32 %v358_v12, %v356_v11 }
 0x2ec   :  { %v362_v16 = vpop.eup %361 }
 0x2ed   :  { %v139_v15 = vmul.f32 %v360_v13, %v122_v14 }
 0x2ef   :  { %v143_v17 = vadd.f32 %v362_v16, %v139_v15 }
 0x2f1   :  { %363 = vlog2.f32 %v143_v17 }
 0x2f2   :  { %365 = vpow2.f32 %v288_v21 }
 0x2fe   :  { %v364_v18 = vpop.eup %363 }
 0x2ff   :  { %v145_v19 = vmul.f32 0.6931472, %v364_v18  ;;  %v366_v22 = vpop.eup %365 }
 0x300   :  { %v290_v24 = vmul.f32 %v366_v22, %v286_v23 }
 0x301   :  { %v146_v20 = vadd.f32 %v145_v19, %v135_v4 }
 0x303   :  { %147 = vst.msk [vmem:[#allocation3] sm:$0xff] %vm89_vm0, %v146_v20 }
 0x30a   :  { %v314_v33 = vld [vmem:[#allocation3] sm:$0xff] }
 0x32f   :  { %v301_v25 = vpop.xlane.xlu1 %300 }
 0x330   :  { %v302_v26 = vadd.f32 %v301_v25, %v290_v24 }
 0x332   :  { %304 = vst.msk [vmem:[#allocation5] sm:$0xff] %vm89_vm0, %v302_v26 }
 0x339   :  { %v310_v27 = vld [vmem:[#allocation5] sm:$0xff] }
 0x33a   :  { %367 = vlog2.f32 %v310_v27 }
 0x347   :  { %v368_v28 = vpop.eup %367 }
 0x348   :  { %v312_v29 = vmul.f32 0.6931472, %v368_v28 }
 0x34a   :  { %v313_v31 = vadd.f32 %v312_v29, %v309_v30 }
 0x34c   :  { %v315_v36 = vsub.f32 %v313_v31, %v314_v33 }
 0x34e   :  { %v316_v37 = vmul.f32 0.125, %v315_v36 }
 0x350   :  { %317 = vst.msk [vmem:[%s564_s5] sm:$0xff] %vm89_vm0, %v316_v37 }
 0x351   :  { %322 = vsyncpa [#allocation7], 1 }
 0x352   :  { %323 = vsyncpa [#allocation9], 1 }
 0x353   :  { %324 = vsyncpa [#allocation12], 1 }

</bundles_post_ra>
